<compile_context>
chip_gen: v6e
topology: v6e:2x2x1
jax: 0.10.0
libtpu: 0.0.40
codegen_flags: <defaults>
</compile_context>

<pallas_src>
import jax
import jax.numpy as jnp
from jax import lax
from jax.experimental import pallas as pl
from jax.experimental.pallas import tpu as pltpu


# ---------------------------------------------------------------------------
# Fused kernel: full CrossAttn forward for one batch element.
# ---------------------------------------------------------------------------
def crossattn_kernel(
    x_ref,                                   # (1, S, I)
    wt_t_ref, bt_ref,                        # Linear_time: (S, HL), (1, HL)
    wq1_ref, wk1_ref, wv1_ref,               # MHA_time weights^T: (HL, HL)
    bq1_ref, bk1_ref, bv1_ref,               # (1, HL)
    wo1_ref, bo1_ref,                        # (HL, HL), (1, HL)
    wvar_t_ref, bvar_ref,                    # Linear_var: (I, HS), (1, HS)
    wq2_ref, wk2_ref, wv2_ref,               # MHA_var weights^T: (HS, HS)
    bq2_ref, bk2_ref, bv2_ref,               # (1, HS)
    wo2_ref, bo2_ref,                        # (HS, HS), (1, HS)
    o_ref,                                   # (1, HL, HS)
):
    f32 = jnp.float32

    def mha(y, wq_t, wk_t, wv_t, bq, bk, bv, wo_t, bo):
        # Single-head attention; 1/sqrt(E) is pre-folded into wq_t / bq.
        q = jnp.dot(y, wq_t, preferred_element_type=f32) + bq
        k = jnp.dot(y, wk_t, preferred_element_type=f32) + bk
        v = jnp.dot(y, wv_t, preferred_element_type=f32) + bv
        # scores = q @ k^T as an NT contraction (no explicit transpose).
        s = lax.dot_general(q, k, (((1,), (1,)), ((), ())),
                            preferred_element_type=f32)
        s = s - jnp.max(s, axis=-1, keepdims=True)
        p = jnp.exp(s)
        p = p * pl.reciprocal(jnp.sum(p, axis=-1, keepdims=True), approx=True)
        a = jnp.dot(p, v, preferred_element_type=f32)
        return jnp.dot(a, wo_t, preferred_element_type=f32) + bo

    x = x_ref[0]                                                    # (S, I)

    # --- x.transpose(1, 2) + attn_time[0] (Linear over the seq axis) ---
    # Tiny in-VMEM transpose (XLU), never touches HBM.
    y1 = jnp.dot(jnp.transpose(x), wt_t_ref[...],
                 preferred_element_type=f32) + bt_ref[...]          # (I, HL)

    # --- attn_time[1]: single-head self attention (embed = HL) ---
    o1 = mha(y1, wq1_ref[...], wk1_ref[...], wv1_ref[...],
             bq1_ref[...], bk1_ref[...], bv1_ref[...],
             wo1_ref[...], bo1_ref[...])                            # (I, HL)

    # --- .transpose(1, 2) + attn_var[0] (Linear over the var axis) ---
    y2 = jnp.dot(jnp.transpose(o1), wvar_t_ref[...],
                 preferred_element_type=f32) + bvar_ref[...]        # (HL, HS)

    # --- attn_var[1]: single-head self attention (embed = HS) ---
    o2 = mha(y2, wq2_ref[...], wk2_ref[...], wv2_ref[...],
             bq2_ref[...], bk2_ref[...], bv2_ref[...],
             wo2_ref[...], bo2_ref[...])                            # (HL, HS)

    o_ref[0] = o2.astype(o_ref.dtype)


# ---------------------------------------------------------------------------
# One-time parameter preparation (NOT per forward call)
# ---------------------------------------------------------------------------
def prepare_params(params):
    """Pre-transpose weights, fold the 1/sqrt(E) scale into Wq/bq, reshape
    biases to (1, E). Call once at load time."""
    def prep_mha(p):
        wq, wk, wv, bq, bk, bv, wo, bo = p
        e = wq.shape[0]
        scale = 1.0 / float(e) ** 0.5
        return (jnp.transpose(wq) * scale, jnp.transpose(wk), jnp.transpose(wv),
                (bq * scale).reshape(1, e), bk.reshape(1, e), bv.reshape(1, e),
                jnp.transpose(wo), bo.reshape(1, e))

    return {
        "wt_t": jnp.transpose(params["w_time"]),
        "bt": params["b_time"].reshape(1, -1),
        "mha_time": prep_mha(params["mha_time"]),
        "wvar_t": jnp.transpose(params["w_var"]),
        "bvar": params["b_var"].reshape(1, -1),
        "mha_var": prep_mha(params["mha_var"]),
    }


# ---------------------------------------------------------------------------
# Forward (single fused pallas_call)
# ---------------------------------------------------------------------------
def decoder_forward(x, prep):
    """x: (B, hid_len, hid_size) -> (B, out_len, out_size)."""
    B, S, I = x.shape
    HL = prep["wt_t"].shape[1]
    HS = prep["wvar_t"].shape[1]

    (wq1, wk1, wv1, bq1, bk1, bv1, wo1, bo1) = prep["mha_time"]
    (wq2, wk2, wv2, bq2, bk2, bv2, wo2, bo2) = prep["mha_var"]
    weights = (prep["wt_t"], prep["bt"],
               wq1, wk1, wv1, bq1, bk1, bv1, wo1, bo1,
               prep["wvar_t"], prep["bvar"],
               wq2, wk2, wv2, bq2, bk2, bv2, wo2, bo2)

    def full_spec(a):
        return pl.BlockSpec(a.shape, lambda b, nd=a.ndim: (0,) * nd)

    in_specs = [pl.BlockSpec((1, S, I), lambda b: (b, 0, 0))]
    in_specs += [full_spec(w) for w in weights]

    return pl.pallas_call(
        crossattn_kernel,
        out_shape=jax.ShapeDtypeStruct((B, HL, HS), x.dtype),
        grid=(B,),
        in_specs=in_specs,
        out_specs=pl.BlockSpec((1, HL, HS), lambda b: (b, 0, 0)),
        compiler_params=pltpu.CompilerParams(
            dimension_semantics=("parallel",)),
    )(x, *weights)


# ---------------------------------------------------------------------------
# Pure-JAX reference (correctness check)
# ---------------------------------------------------------------------------
def _mha_ref(x, p):
    wq, wk, wv, bq, bk, bv, wo, bo = p
    e = x.shape[-1]
    q = x @ wq.T + bq
    k = x @ wk.T + bk
    v = x @ wv.T + bv
    s = jnp.einsum("ble,bme->blm", q, k) / jnp.sqrt(jnp.float32(e))
    a = jnp.einsum("blm,bme->ble", jax.nn.softmax(s, axis=-1), v)
    return a @ wo.T + bo


def decoder_ref(x, params):
    out = jnp.transpose(x, (0, 2, 1))
    out = out @ params["w_time"].T + params["b_time"]
    out = _mha_ref(out, params["mha_time"])
    out = jnp.transpose(out, (0, 2, 1))
    out = out @ params["w_var"].T + params["b_var"]
    return _mha_ref(out, params["mha_var"])


# ---------------------------------------------------------------------------
# Parameter init + driver
# ---------------------------------------------------------------------------
def init_params(key, hid_len, out_len, hid_size, out_size):
    # Decoder(hid_len, out_len, hid_size, out_size) builds
    # CrossAttn(seq_len=hid_len, hid_len=out_len, input_size=hid_size, hid_size=out_size).
    # We use dims where seq_len != hid_len and input_size != hid_size so both
    # Linears exist.  (The nn.Identity branch is equivalent to an identity
    # weight + zero bias if ever needed.)
    keys = jax.random.split(key, 6)

    def mha_params(ks, e):
        wq = 0.1 * jax.random.normal(ks[0], (e, e), jnp.float32)
        wk = 0.1 * jax.random.normal(ks[1], (e, e), jnp.float32)
        wv = 0.1 * jax.random.normal(ks[2], (e, e), jnp.float32)
        bq = 0.01 * jax.random.normal(ks[3], (e,), jnp.float32)
        bk = 0.01 * jax.random.normal(ks[4], (e,), jnp.float32)
        bv = 0.01 * jax.random.normal(ks[5], (e,), jnp.float32)
        wo = 0.1 * jax.random.normal(ks[6], (e, e), jnp.float32)
        bo = 0.01 * jax.random.normal(ks[7], (e,), jnp.float32)
        return (wq, wk, wv, bq, bk, bv, wo, bo)

    return {
        # nn.Linear(hid_len -> out_len): weight (out_len, hid_len)
        "w_time": 0.1 * jax.random.normal(keys[0], (out_len, hid_len), jnp.float32),
        "b_time": 0.01 * jax.random.normal(keys[1], (out_len,), jnp.float32),
        "mha_time": mha_params(jax.random.split(keys[2], 8), out_len),
        # nn.Linear(hid_size -> out_size): weight (out_size, hid_size)
        "w_var": 0.1 * jax.random.normal(keys[3], (out_size, hid_size), jnp.float32),
        "b_var": 0.01 * jax.random.normal(keys[4], (out_size,), jnp.float32),
        "mha_var": mha_params(jax.random.split(keys[5], 8), out_size),
    }


if __name__ == "__main__":
    # Small shapes consistent with Decoder(hid_len, out_len, hid_size, out_size)
    B, HID_LEN, OUT_LEN, HID_SIZE, OUT_SIZE = 2, 16, 32, 8, 4

    key = jax.random.PRNGKey(0)
    k_x, k_p = jax.random.split(key)
    x = jax.random.normal(k_x, (B, HID_LEN, HID_SIZE), jnp.float32)
    params = init_params(k_p, HID_LEN, OUT_LEN, HID_SIZE, OUT_SIZE)

    prep = prepare_params(params)          # one-time weight prep
    fwd = jax.jit(decoder_forward)

    out = jax.block_until_ready(fwd(x, prep))
    assert out.shape == (B, OUT_LEN, OUT_SIZE), out.shape

    ref = jax.block_until_ready(decoder_ref(x, params))
    # approx=True softmax reciprocal -> slightly looser tolerance than exact.
    assert jnp.allclose(out, ref, atol=2e-3, rtol=2e-3), (
        float(jnp.max(jnp.abs(out - ref)))
    )

    print("KERNEL_OK")
</pallas_src>

<mosaic_0001>
module attributes {stable_mosaic.version = 11 : i64} {
  func.func @crossattn_kernel(%arg0: i32, %arg1: memref<1x16x8xf32, #tpu.memory_space<vmem>>, %arg2: memref<16x32xf32, #tpu.memory_space<vmem>>, %arg3: memref<1x32xf32, #tpu.memory_space<vmem>>, %arg4: memref<32x32xf32, #tpu.memory_space<vmem>>, %arg5: memref<32x32xf32, #tpu.memory_space<vmem>>, %arg6: memref<32x32xf32, #tpu.memory_space<vmem>>, %arg7: memref<1x32xf32, #tpu.memory_space<vmem>>, %arg8: memref<1x32xf32, #tpu.memory_space<vmem>>, %arg9: memref<1x32xf32, #tpu.memory_space<vmem>>, %arg10: memref<32x32xf32, #tpu.memory_space<vmem>>, %arg11: memref<1x32xf32, #tpu.memory_space<vmem>>, %arg12: memref<8x4xf32, #tpu.memory_space<vmem>>, %arg13: memref<1x4xf32, #tpu.memory_space<vmem>>, %arg14: memref<4x4xf32, #tpu.memory_space<vmem>>, %arg15: memref<4x4xf32, #tpu.memory_space<vmem>>, %arg16: memref<4x4xf32, #tpu.memory_space<vmem>>, %arg17: memref<1x4xf32, #tpu.memory_space<vmem>>, %arg18: memref<1x4xf32, #tpu.memory_space<vmem>>, %arg19: memref<1x4xf32, #tpu.memory_space<vmem>>, %arg20: memref<4x4xf32, #tpu.memory_space<vmem>>, %arg21: memref<1x4xf32, #tpu.memory_space<vmem>>, %arg22: memref<1x32x4xf32, #tpu.memory_space<vmem>>) attributes {dimension_semantics = [#tpu.dimension_semantics<parallel>], iteration_bounds = array<i64: 2>, scalar_prefetch = 0 : i64, scratch_operands = 0 : i64, tpu.core_type = #tpu.core_type<tc>, window_params = [{transform_indices = @transform_0, window_bounds = array<i64: 1, 16, 8>}, {pipeline_mode = #tpu.pipeline_mode<synchronous>, transform_indices = @transform_1, window_bounds = array<i64: 16, 32>}, {pipeline_mode = #tpu.pipeline_mode<synchronous>, transform_indices = @transform_2, window_bounds = array<i64: 1, 32>}, {pipeline_mode = #tpu.pipeline_mode<synchronous>, transform_indices = @transform_3, window_bounds = array<i64: 32, 32>}, {pipeline_mode = #tpu.pipeline_mode<synchronous>, transform_indices = @transform_4, window_bounds = array<i64: 32, 32>}, {pipeline_mode = #tpu.pipeline_mode<synchronous>, transform_indices = @transform_5, window_bounds = array<i64: 32, 32>}, {pipeline_mode = #tpu.pipeline_mode<synchronous>, transform_indices = @transform_6, window_bounds = array<i64: 1, 32>}, {pipeline_mode = #tpu.pipeline_mode<synchronous>, transform_indices = @transform_7, window_bounds = array<i64: 1, 32>}, {pipeline_mode = #tpu.pipeline_mode<synchronous>, transform_indices = @transform_8, window_bounds = array<i64: 1, 32>}, {pipeline_mode = #tpu.pipeline_mode<synchronous>, transform_indices = @transform_9, window_bounds = array<i64: 32, 32>}, {pipeline_mode = #tpu.pipeline_mode<synchronous>, transform_indices = @transform_10, window_bounds = array<i64: 1, 32>}, {pipeline_mode = #tpu.pipeline_mode<synchronous>, transform_indices = @transform_11, window_bounds = array<i64: 8, 4>}, {pipeline_mode = #tpu.pipeline_mode<synchronous>, transform_indices = @transform_12, window_bounds = array<i64: 1, 4>}, {pipeline_mode = #tpu.pipeline_mode<synchronous>, transform_indices = @transform_13, window_bounds = array<i64: 4, 4>}, {pipeline_mode = #tpu.pipeline_mode<synchronous>, transform_indices = @transform_14, window_bounds = array<i64: 4, 4>}, {pipeline_mode = #tpu.pipeline_mode<synchronous>, transform_indices = @transform_15, window_bounds = array<i64: 4, 4>}, {pipeline_mode = #tpu.pipeline_mode<synchronous>, transform_indices = @transform_16, window_bounds = array<i64: 1, 4>}, {pipeline_mode = #tpu.pipeline_mode<synchronous>, transform_indices = @transform_17, window_bounds = array<i64: 1, 4>}, {pipeline_mode = #tpu.pipeline_mode<synchronous>, transform_indices = @transform_18, window_bounds = array<i64: 1, 4>}, {pipeline_mode = #tpu.pipeline_mode<synchronous>, transform_indices = @transform_19, window_bounds = array<i64: 4, 4>}, {pipeline_mode = #tpu.pipeline_mode<synchronous>, transform_indices = @transform_20, window_bounds = array<i64: 1, 4>}, {transform_indices = @transform_21, window_bounds = array<i64: 1, 32, 4>}]} {
    %c0 = arith.constant 0 : index
    %c0_0 = arith.constant 0 : index
    %c0_1 = arith.constant 0 : index
    %0 = vector.load %arg1[%c0, %c0_0, %c0_1] : memref<1x16x8xf32, #tpu.memory_space<vmem>>, vector<1x16x8xf32>
    %1 = vector.shape_cast %0 : vector<1x16x8xf32> to vector<16x8xf32>
    %2 = tpu.transpose %1, [1, 0] : vector<16x8xf32> -> vector<8x16xf32>
    %c0_2 = arith.constant 0 : index
    %c0_3 = arith.constant 0 : index
    %3 = vector.load %arg2[%c0_2, %c0_3] : memref<16x32xf32, #tpu.memory_space<vmem>>, vector<16x32xf32>
    %cst = arith.constant dense<0.000000e+00> : vector<8x32xf32>
    %4 = tpu.matmul %2, %3, %cst {dimension_numbers = #tpu.dot_dimension_numbers<[1], [0], [0], [1], [0, 0, 1, 1], [], []>} : vector<8x16xf32>, vector<16x32xf32>, vector<8x32xf32> -> vector<8x32xf32>
    %c0_4 = arith.constant 0 : index
    %c0_5 = arith.constant 0 : index
    %5 = vector.load %arg3[%c0_4, %c0_5] : memref<1x32xf32, #tpu.memory_space<vmem>>, vector<1x32xf32>
    %6 = vector.broadcast %5 : vector<1x32xf32> to vector<8x32xf32>
    %7 = arith.addf %4, %6 : vector<8x32xf32>
    %c0_6 = arith.constant 0 : index
    %c0_7 = arith.constant 0 : index
    %8 = vector.load %arg4[%c0_6, %c0_7] : memref<32x32xf32, #tpu.memory_space<vmem>>, vector<32x32xf32>
    %c0_8 = arith.constant 0 : index
    %c0_9 = arith.constant 0 : index
    %9 = vector.load %arg5[%c0_8, %c0_9] : memref<32x32xf32, #tpu.memory_space<vmem>>, vector<32x32xf32>
    %c0_10 = arith.constant 0 : index
    %c0_11 = arith.constant 0 : index
    %10 = vector.load %arg6[%c0_10, %c0_11] : memref<32x32xf32, #tpu.memory_space<vmem>>, vector<32x32xf32>
    %c0_12 = arith.constant 0 : index
    %c0_13 = arith.constant 0 : index
    %11 = vector.load %arg7[%c0_12, %c0_13] : memref<1x32xf32, #tpu.memory_space<vmem>>, vector<1x32xf32>
    %c0_14 = arith.constant 0 : index
    %c0_15 = arith.constant 0 : index
    %12 = vector.load %arg8[%c0_14, %c0_15] : memref<1x32xf32, #tpu.memory_space<vmem>>, vector<1x32xf32>
    %c0_16 = arith.constant 0 : index
    %c0_17 = arith.constant 0 : index
    %13 = vector.load %arg9[%c0_16, %c0_17] : memref<1x32xf32, #tpu.memory_space<vmem>>, vector<1x32xf32>
    %c0_18 = arith.constant 0 : index
    %c0_19 = arith.constant 0 : index
    %14 = vector.load %arg10[%c0_18, %c0_19] : memref<32x32xf32, #tpu.memory_space<vmem>>, vector<32x32xf32>
    %c0_20 = arith.constant 0 : index
    %c0_21 = arith.constant 0 : index
    %15 = vector.load %arg11[%c0_20, %c0_21] : memref<1x32xf32, #tpu.memory_space<vmem>>, vector<1x32xf32>
    %cst_22 = arith.constant dense<0.000000e+00> : vector<8x32xf32>
    %16 = tpu.matmul %7, %8, %cst_22 {dimension_numbers = #tpu.dot_dimension_numbers<[1], [0], [0], [1], [0, 0, 1, 1], [], []>} : vector<8x32xf32>, vector<32x32xf32>, vector<8x32xf32> -> vector<8x32xf32>
    %17 = vector.broadcast %11 : vector<1x32xf32> to vector<8x32xf32>
    %18 = arith.addf %16, %17 : vector<8x32xf32>
    %cst_23 = arith.constant dense<0.000000e+00> : vector<8x32xf32>
    %19 = tpu.matmul %7, %9, %cst_23 {dimension_numbers = #tpu.dot_dimension_numbers<[1], [0], [0], [1], [0, 0, 1, 1], [], []>} : vector<8x32xf32>, vector<32x32xf32>, vector<8x32xf32> -> vector<8x32xf32>
    %20 = vector.broadcast %12 : vector<1x32xf32> to vector<8x32xf32>
    %21 = arith.addf %19, %20 : vector<8x32xf32>
    %cst_24 = arith.constant dense<0.000000e+00> : vector<8x32xf32>
    %22 = tpu.matmul %7, %10, %cst_24 {dimension_numbers = #tpu.dot_dimension_numbers<[1], [0], [0], [1], [0, 0, 1, 1], [], []>} : vector<8x32xf32>, vector<32x32xf32>, vector<8x32xf32> -> vector<8x32xf32>
    %23 = vector.broadcast %13 : vector<1x32xf32> to vector<8x32xf32>
    %24 = arith.addf %22, %23 : vector<8x32xf32>
    %cst_25 = arith.constant dense<0.000000e+00> : vector<8x8xf32>
    %25 = tpu.matmul %18, %21, %cst_25 {dimension_numbers = #tpu.dot_dimension_numbers<[1], [1], [0], [0], [0, 0, 1, 0], [], []>} : vector<8x32xf32>, vector<8x32xf32>, vector<8x8xf32> -> vector<8x8xf32>
    %cst_26 = arith.constant dense<0xFF800000> : vector<8xf32>
    %26 = vector.multi_reduction <maximumf>, %25, %cst_26 [1] : vector<8x8xf32> to vector<8xf32>
    %27 = vector.shape_cast %26 : vector<8xf32> to vector<8x1xf32>
    %28 = vector.broadcast %27 : vector<8x1xf32> to vector<8x8xf32>
    %29 = arith.subf %25, %28 : vector<8x8xf32>
    %30 = math.exp %29 : vector<8x8xf32>
    %cst_27 = arith.constant dense<0.000000e+00> : vector<8xf32>
    %31 = vector.multi_reduction <add>, %30, %cst_27 [1] : vector<8x8xf32> to vector<8xf32>
    %32 = vector.shape_cast %31 : vector<8xf32> to vector<8x1xf32>
    %33 = tpu.reciprocal %32 {approx = true} : vector<8x1xf32> -> vector<8x1xf32>
    %34 = vector.broadcast %33 : vector<8x1xf32> to vector<8x8xf32>
    %35 = arith.mulf %30, %34 : vector<8x8xf32>
    %cst_28 = arith.constant dense<0.000000e+00> : vector<8x32xf32>
    %36 = tpu.matmul %35, %24, %cst_28 {dimension_numbers = #tpu.dot_dimension_numbers<[1], [0], [0], [1], [0, 0, 1, 1], [], []>} : vector<8x8xf32>, vector<8x32xf32>, vector<8x32xf32> -> vector<8x32xf32>
    %cst_29 = arith.constant dense<0.000000e+00> : vector<8x32xf32>
    %37 = tpu.matmul %36, %14, %cst_29 {dimension_numbers = #tpu.dot_dimension_numbers<[1], [0], [0], [1], [0, 0, 1, 1], [], []>} : vector<8x32xf32>, vector<32x32xf32>, vector<8x32xf32> -> vector<8x32xf32>
    %38 = vector.broadcast %15 : vector<1x32xf32> to vector<8x32xf32>
    %39 = arith.addf %37, %38 : vector<8x32xf32>
    %40 = tpu.transpose %39, [1, 0] : vector<8x32xf32> -> vector<32x8xf32>
    %c0_30 = arith.constant 0 : index
    %c0_31 = arith.constant 0 : index
    %41 = vector.load %arg12[%c0_30, %c0_31] : memref<8x4xf32, #tpu.memory_space<vmem>>, vector<8x4xf32>
    %cst_32 = arith.constant dense<0.000000e+00> : vector<32x4xf32>
    %42 = tpu.matmul %40, %41, %cst_32 {dimension_numbers = #tpu.dot_dimension_numbers<[1], [0], [0], [1], [0, 0, 1, 1], [], []>} : vector<32x8xf32>, vector<8x4xf32>, vector<32x4xf32> -> vector<32x4xf32>
    %c0_33 = arith.constant 0 : index
    %c0_34 = arith.constant 0 : index
    %43 = vector.load %arg13[%c0_33, %c0_34] : memref<1x4xf32, #tpu.memory_space<vmem>>, vector<1x4xf32>
    %44 = vector.broadcast %43 : vector<1x4xf32> to vector<32x4xf32>
    %45 = arith.addf %42, %44 : vector<32x4xf32>
    %c0_35 = arith.constant 0 : index
    %c0_36 = arith.constant 0 : index
    %46 = vector.load %arg14[%c0_35, %c0_36] : memref<4x4xf32, #tpu.memory_space<vmem>>, vector<4x4xf32>
    %c0_37 = arith.constant 0 : index
    %c0_38 = arith.constant 0 : index
    %47 = vector.load %arg15[%c0_37, %c0_38] : memref<4x4xf32, #tpu.memory_space<vmem>>, vector<4x4xf32>
    %c0_39 = arith.constant 0 : index
    %c0_40 = arith.constant 0 : index
    %48 = vector.load %arg16[%c0_39, %c0_40] : memref<4x4xf32, #tpu.memory_space<vmem>>, vector<4x4xf32>
    %c0_41 = arith.constant 0 : index
    %c0_42 = arith.constant 0 : index
    %49 = vector.load %arg17[%c0_41, %c0_42] : memref<1x4xf32, #tpu.memory_space<vmem>>, vector<1x4xf32>
    %c0_43 = arith.constant 0 : index
    %c0_44 = arith.constant 0 : index
    %50 = vector.load %arg18[%c0_43, %c0_44] : memref<1x4xf32, #tpu.memory_space<vmem>>, vector<1x4xf32>
    %c0_45 = arith.constant 0 : index
    %c0_46 = arith.constant 0 : index
    %51 = vector.load %arg19[%c0_45, %c0_46] : memref<1x4xf32, #tpu.memory_space<vmem>>, vector<1x4xf32>
    %c0_47 = arith.constant 0 : index
    %c0_48 = arith.constant 0 : index
    %52 = vector.load %arg20[%c0_47, %c0_48] : memref<4x4xf32, #tpu.memory_space<vmem>>, vector<4x4xf32>
    %c0_49 = arith.constant 0 : index
    %c0_50 = arith.constant 0 : index
    %53 = vector.load %arg21[%c0_49, %c0_50] : memref<1x4xf32, #tpu.memory_space<vmem>>, vector<1x4xf32>
    %cst_51 = arith.constant dense<0.000000e+00> : vector<32x4xf32>
    %54 = tpu.matmul %45, %46, %cst_51 {dimension_numbers = #tpu.dot_dimension_numbers<[1], [0], [0], [1], [0, 0, 1, 1], [], []>} : vector<32x4xf32>, vector<4x4xf32>, vector<32x4xf32> -> vector<32x4xf32>
    %55 = vector.broadcast %49 : vector<1x4xf32> to vector<32x4xf32>
    %56 = arith.addf %54, %55 : vector<32x4xf32>
    %cst_52 = arith.constant dense<0.000000e+00> : vector<32x4xf32>
    %57 = tpu.matmul %45, %47, %cst_52 {dimension_numbers = #tpu.dot_dimension_numbers<[1], [0], [0], [1], [0, 0, 1, 1], [], []>} : vector<32x4xf32>, vector<4x4xf32>, vector<32x4xf32> -> vector<32x4xf32>
    %58 = vector.broadcast %50 : vector<1x4xf32> to vector<32x4xf32>
    %59 = arith.addf %57, %58 : vector<32x4xf32>
    %cst_53 = arith.constant dense<0.000000e+00> : vector<32x4xf32>
    %60 = tpu.matmul %45, %48, %cst_53 {dimension_numbers = #tpu.dot_dimension_numbers<[1], [0], [0], [1], [0, 0, 1, 1], [], []>} : vector<32x4xf32>, vector<4x4xf32>, vector<32x4xf32> -> vector<32x4xf32>
    %61 = vector.broadcast %51 : vector<1x4xf32> to vector<32x4xf32>
    %62 = arith.addf %60, %61 : vector<32x4xf32>
    %cst_54 = arith.constant dense<0.000000e+00> : vector<32x32xf32>
    %63 = tpu.matmul %56, %59, %cst_54 {dimension_numbers = #tpu.dot_dimension_numbers<[1], [1], [0], [0], [0, 0, 1, 0], [], []>} : vector<32x4xf32>, vector<32x4xf32>, vector<32x32xf32> -> vector<32x32xf32>
    %cst_55 = arith.constant dense<0xFF800000> : vector<32xf32>
    %64 = vector.multi_reduction <maximumf>, %63, %cst_55 [1] : vector<32x32xf32> to vector<32xf32>
    %65 = vector.shape_cast %64 : vector<32xf32> to vector<32x1xf32>
    %66 = vector.broadcast %65 : vector<32x1xf32> to vector<32x32xf32>
    %67 = arith.subf %63, %66 : vector<32x32xf32>
    %68 = math.exp %67 : vector<32x32xf32>
    %cst_56 = arith.constant dense<0.000000e+00> : vector<32xf32>
    %69 = vector.multi_reduction <add>, %68, %cst_56 [1] : vector<32x32xf32> to vector<32xf32>
    %70 = vector.shape_cast %69 : vector<32xf32> to vector<32x1xf32>
    %71 = tpu.reciprocal %70 {approx = true} : vector<32x1xf32> -> vector<32x1xf32>
    %72 = vector.broadcast %71 : vector<32x1xf32> to vector<32x32xf32>
    %73 = arith.mulf %68, %72 : vector<32x32xf32>
    %cst_57 = arith.constant dense<0.000000e+00> : vector<32x4xf32>
    %74 = tpu.matmul %73, %62, %cst_57 {dimension_numbers = #tpu.dot_dimension_numbers<[1], [0], [0], [1], [0, 0, 1, 1], [], []>} : vector<32x32xf32>, vector<32x4xf32>, vector<32x4xf32> -> vector<32x4xf32>
    %cst_58 = arith.constant dense<0.000000e+00> : vector<32x4xf32>
    %75 = tpu.matmul %74, %52, %cst_58 {dimension_numbers = #tpu.dot_dimension_numbers<[1], [0], [0], [1], [0, 0, 1, 1], [], []>} : vector<32x4xf32>, vector<4x4xf32>, vector<32x4xf32> -> vector<32x4xf32>
    %76 = vector.broadcast %53 : vector<1x4xf32> to vector<32x4xf32>
    %77 = arith.addf %75, %76 : vector<32x4xf32>
    %c0_59 = arith.constant 0 : index
    %c0_60 = arith.constant 0 : index
    %c0_61 = arith.constant 0 : index
    %78 = vector.load %arg22[%c0_59, %c0_60, %c0_61] : memref<1x32x4xf32, #tpu.memory_space<vmem>>, vector<1x32x4xf32>
    %79 = vector.shape_cast %78 : vector<1x32x4xf32> to vector<32x4xf32>
    %80 = vector.shape_cast %77 : vector<32x4xf32> to vector<1x32x4xf32>
    tpu.vector_store %arg22[%c0_59, %c0_60, %c0_61], %80 {strides = array<i32>} : memref<1x32x4xf32, #tpu.memory_space<vmem>>, vector<1x32x4xf32>,
    return
  }
  func.func @transform_0(%arg0: i32) -> (i32, i32, i32) {
    %c0_i32 = arith.constant 0 : i32
    %c0_i32_0 = arith.constant 0 : i32
    %c0_i32_1 = arith.constant 0 : i32
    return %arg0, %c0_i32, %c0_i32_0 : i32, i32, i32
  }
  func.func @transform_1(%arg0: i32) -> (i32, i32) {
    %c0_i32 = arith.constant 0 : i32
    %c0_i32_0 = arith.constant 0 : i32
    %c0_i32_1 = arith.constant 0 : i32
    return %c0_i32, %c0_i32_0 : i32, i32
  }
  func.func @transform_2(%arg0: i32) -> (i32, i32) {
    %c0_i32 = arith.constant 0 : i32
    %c0_i32_0 = arith.constant 0 : i32
    %c0_i32_1 = arith.constant 0 : i32
    return %c0_i32, %c0_i32_0 : i32, i32
  }
  func.func @transform_3(%arg0: i32) -> (i32, i32) {
    %c0_i32 = arith.constant 0 : i32
    %c0_i32_0 = arith.constant 0 : i32
    %c0_i32_1 = arith.constant 0 : i32
    return %c0_i32, %c0_i32_0 : i32, i32
  }
  func.func @transform_4(%arg0: i32) -> (i32, i32) {
    %c0_i32 = arith.constant 0 : i32
    %c0_i32_0 = arith.constant 0 : i32
    %c0_i32_1 = arith.constant 0 : i32
    return %c0_i32, %c0_i32_0 : i32, i32
  }
  func.func @transform_5(%arg0: i32) -> (i32, i32) {
    %c0_i32 = arith.constant 0 : i32
    %c0_i32_0 = arith.constant 0 : i32
    %c0_i32_1 = arith.constant 0 : i32
    return %c0_i32, %c0_i32_0 : i32, i32
  }
  func.func @transform_6(%arg0: i32) -> (i32, i32) {
    %c0_i32 = arith.constant 0 : i32
    %c0_i32_0 = arith.constant 0 : i32
    %c0_i32_1 = arith.constant 0 : i32
    return %c0_i32, %c0_i32_0 : i32, i32
  }
  func.func @transform_7(%arg0: i32) -> (i32, i32) {
    %c0_i32 = arith.constant 0 : i32
    %c0_i32_0 = arith.constant 0 : i32
    %c0_i32_1 = arith.constant 0 : i32
    return %c0_i32, %c0_i32_0 : i32, i32
  }
  func.func @transform_8(%arg0: i32) -> (i32, i32) {
    %c0_i32 = arith.constant 0 : i32
    %c0_i32_0 = arith.constant 0 : i32
    %c0_i32_1 = arith.constant 0 : i32
    return %c0_i32, %c0_i32_0 : i32, i32
  }
  func.func @transform_9(%arg0: i32) -> (i32, i32) {
    %c0_i32 = arith.constant 0 : i32
    %c0_i32_0 = arith.constant 0 : i32
    %c0_i32_1 = arith.constant 0 : i32
    return %c0_i32, %c0_i32_0 : i32, i32
  }
  func.func @transform_10(%arg0: i32) -> (i32, i32) {
    %c0_i32 = arith.constant 0 : i32
    %c0_i32_0 = arith.constant 0 : i32
    %c0_i32_1 = arith.constant 0 : i32
    return %c0_i32, %c0_i32_0 : i32, i32
  }
  func.func @transform_11(%arg0: i32) -> (i32, i32) {
    %c0_i32 = arith.constant 0 : i32
    %c0_i32_0 = arith.constant 0 : i32
    %c0_i32_1 = arith.constant 0 : i32
    return %c0_i32, %c0_i32_0 : i32, i32
  }
  func.func @transform_12(%arg0: i32) -> (i32, i32) {
    %c0_i32 = arith.constant 0 : i32
    %c0_i32_0 = arith.constant 0 : i32
    %c0_i32_1 = arith.constant 0 : i32
    return %c0_i32, %c0_i32_0 : i32, i32
  }
  func.func @transform_13(%arg0: i32) -> (i32, i32) {
    %c0_i32 = arith.constant 0 : i32
    %c0_i32_0 = arith.constant 0 : i32
    %c0_i32_1 = arith.constant 0 : i32
    return %c0_i32, %c0_i32_0 : i32, i32
  }
  func.func @transform_14(%arg0: i32) -> (i32, i32) {
    %c0_i32 = arith.constant 0 : i32
    %c0_i32_0 = arith.constant 0 : i32
    %c0_i32_1 = arith.constant 0 : i32
    return %c0_i32, %c0_i32_0 : i32, i32
  }
  func.func @transform_15(%arg0: i32) -> (i32, i32) {
    %c0_i32 = arith.constant 0 : i32
    %c0_i32_0 = arith.constant 0 : i32
    %c0_i32_1 = arith.constant 0 : i32
    return %c0_i32, %c0_i32_0 : i32, i32
  }
  func.func @transform_16(%arg0: i32) -> (i32, i32) {
    %c0_i32 = arith.constant 0 : i32
    %c0_i32_0 = arith.constant 0 : i32
    %c0_i32_1 = arith.constant 0 : i32
    return %c0_i32, %c0_i32_0 : i32, i32
  }
  func.func @transform_17(%arg0: i32) -> (i32, i32) {
    %c0_i32 = arith.constant 0 : i32
    %c0_i32_0 = arith.constant 0 : i32
    %c0_i32_1 = arith.constant 0 : i32
    return %c0_i32, %c0_i32_0 : i32, i32
  }
  func.func @transform_18(%arg0: i32) -> (i32, i32) {
    %c0_i32 = arith.constant 0 : i32
    %c0_i32_0 = arith.constant 0 : i32
    %c0_i32_1 = arith.constant 0 : i32
    return %c0_i32, %c0_i32_0 : i32, i32
  }
  func.func @transform_19(%arg0: i32) -> (i32, i32) {
    %c0_i32 = arith.constant 0 : i32
    %c0_i32_0 = arith.constant 0 : i32
    %c0_i32_1 = arith.constant 0 : i32
    return %c0_i32, %c0_i32_0 : i32, i32
  }
  func.func @transform_20(%arg0: i32) -> (i32, i32) {
    %c0_i32 = arith.constant 0 : i32
    %c0_i32_0 = arith.constant 0 : i32
    %c0_i32_1 = arith.constant 0 : i32
    return %c0_i32, %c0_i32_0 : i32, i32
  }
  func.func @transform_21(%arg0: i32) -> (i32, i32, i32) {
    %c0_i32 = arith.constant 0 : i32
    %c0_i32_0 = arith.constant 0 : i32
    %c0_i32_1 = arith.constant 0 : i32
    return %arg0, %c0_i32, %c0_i32_0 : i32, i32, i32
  }
}

</mosaic_0001>

<bundles_post_ra>
// kernel: decoder_forward.1
= control target key start
LH: loop header
LB: loop body
LE: loop exit
PB: predicated region body
PF: predicated region fallthrough
CT: control target
= control target key end

     0   :  { %s3693_s0 = inlined_call_operand.vmem [shape: f32[2,16,8], index: 0, kind: input, shape index: {}]   ;;  %s3694_s1 = inlined_call_operand.vmem [shape: f32[16,32], index: 1, kind: input, shape index: {}]   ;;  %s3695_s2 = inlined_call_operand.hbm [shape: f32[1,32], index: 2, kind: input, shape index: {}]   ;;  %s3696_s3 = inlined_call_operand.vmem [shape: f32[32,32], index: 3, kind: input, shape index: {}]   ;;  %s3697_s4 = inlined_call_operand.vmem [shape: f32[32,32], index: 4, kind: input, shape index: {}]   ;;  %s3698_s5 = inlined_call_operand.hbm [shape: f32[32,32], index: 5, kind: input, shape index: {}]   ;;  %s3699_s6 = inlined_call_operand.hbm [shape: f32[1,32], index: 6, kind: input, shape index: {}]   ;;  %s3700_s7 = inlined_call_operand.hbm [shape: f32[1,32], index: 7, kind: input, shape index: {}]   ;;  %s3701_s8 = inlined_call_operand.hbm [shape: f32[1,32], index: 8, kind: input, shape index: {}]   ;;  %s3702_s9 = inlined_call_operand.hbm [shape: f32[32,32], index: 9, kind: input, shape index: {}]   ;;  %s3703_s10 = inlined_call_operand.hbm [shape: f32[1,32], index: 10, kind: input, shape index: {}]   ;;  %s3704_s11 = inlined_call_operand.vmem [shape: f32[8,4], index: 11, kind: input, shape index: {}]   ;;  %s3705_s12 = inlined_call_operand.hbm [shape: f32[1,4], index: 12, kind: input, shape index: {}]   ;;  %s3706_s13 = inlined_call_operand.hbm [shape: f32[4,4], index: 13, kind: input, shape index: {}]   ;;  %s3707_s14 = inlined_call_operand.hbm [shape: f32[4,4], index: 14, kind: input, shape index: {}]   ;;  %s3708_s15 = inlined_call_operand.hbm [shape: f32[4,4], index: 15, kind: input, shape index: {}]   ;;  %s3709_s16 = inlined_call_operand.vmem [shape: f32[1,4], index: 16, kind: input, shape index: {}]   ;;  %s3710_s17 = inlined_call_operand.hbm [shape: f32[1,4], index: 17, kind: input, shape index: {}]   ;;  %s3711_s18 = inlined_call_operand.hbm [shape: f32[1,4], index: 18, kind: input, shape index: {}]   ;;  %s3712_s19 = inlined_call_operand.vmem [shape: f32[4,4], index: 19, kind: input, shape index: {}]   ;;  %s3713_s20 = inlined_call_operand.vmem [shape: f32[1,4], index: 20, kind: input, shape index: {}]   ;;  %s3714_s21 = inlined_call_operand.vmem [shape: f32[2,32,4], index: 21, kind: output, shape index: {}]  }
   0x1   :  { %3721 = sst [smem:[#allocation30_spill]] %s3693_s0 }
   0x2   :  { %3722 = sst [smem:[#allocation31_spill]] %s3694_s1 }
   0x3   :  { %3723 = sst [smem:[#allocation32_spill]] %s3695_s2 }
   0x4   :  { %3724 = sst [smem:[#allocation33_spill]] %s3696_s3 }
   0x5   :  { %3725 = sst [smem:[#allocation34_spill]] %s3697_s4 }
   0x6   :  { %3726 = sst [smem:[#allocation35_spill]] %s3698_s5 }
   0x7   :  { %3727 = sst [smem:[#allocation36_spill]] %s3713_s20 }
   0x8   :  { %3728 = sst [smem:[#allocation37_spill]] %s3714_s21 }
   0x9   :  { %26 = vsyncpa [#allocation3], 0 }
   0xa   :  { %27 = vsyncpa [#allocation5], 0 }
   0xb   :  { %28 = vsyncpa [#allocation8], 0 }
   0xc   :  { %29 = vsyncpa [#allocation11], 0 }
   0xd   :  { %30 = vsyncpa [#allocation14], 0 }
   0xe   :  { %31 = vsyncpa [#allocation17], 0 }
   0xf   :  { %32 = vsyncpa [#allocation20], 0  ;;  %s3369_s2 = smov 0  }
  0x10 LB: > { %3729 = sst [smem:[#allocation29_spill]] %s3240_s2  ;;  %s3242_s25 = smov [#allocation4]   ;;  %s3240_s2 = sphi %s3369_s2, %s38_s2  }
  0x11   : > { %s547_s26 = sshll.u32 %s3242_s25, 4  ;;  %s3375_s27 = sadd.s32 4294967295, %s3240_s2   ;;  %s548_s26 = int_to_ptr.vmem [resolvable:$true] %s547_s26 }
  0x12   : > { %p2417_p0 = scmp.ge.s32.totalorder %s3240_s2, 1  ;;  %p515_p1 = scmp.lt.s32.totalorder %s3240_s2, 3 }
  0x13   : > { %p3719_p2 = scmp.eq.s32.totalorder %s3375_s27, 0  ;;  %s3243_s28 = smov [#allocation7]  }
  0x14   : > { %p3380_p3 = pnand %p2417_p0, %p515_p1  ;;  %s572_s29 = sshll.u32 %s3243_s28, 4  ;;  %s3386_s29 = int_to_ptr.vmem [resolvable:$true] %s572_s29 }
  0x15   : > { %s3244_s4 = smov [#allocation10]   ;;  %s3245_s5 = smov [#allocation13]  }
  0x16   : > { %s3730_s3 = scalar_select %p3380_p3, 1, 0 }
  0x17   : > { %p2757_p4 = pneg %p3380_p3  ;;  %s593_s30 = sshll.u32 %s3244_s4, 4  ;;  %s3394_s30 = int_to_ptr.vmem [resolvable:$true] %s593_s30 }
  0x18   : > { %s3396_s22 = sshll.u32 %s3245_s5, 4  ;;  %s2879_s1 = scalar_lea.vmem %s548_s26, 512  ;;  %s622_s22 = int_to_ptr.vmem [resolvable:$true] %s3396_s22 }
  0x19   : > { %p3390_p5 = pnand %p3719_p2, %p2757_p4  ;;  %p2880_p7 = scmp.ne.s32.totalorder %s548_s26, %s2879_s1 }
  0x1a   : > { %p2887_p10 = scmp.lt.s32.totalorder %s548_s26, %s548_s26  ;;  %p2888_p11 = scmp.lt.s32.totalorder %s2879_s1, %s2879_s1 }
  0x1b   : > { %p3400_p6 = pneg %p3390_p5 }
  0x1c   : > { %p2889_p12 = por %p2888_p11, %p2887_p10 }
  0x1d   : > { %p2882_p8 = pnand %p2880_p7, %p3400_p6 }
  0x1f   : > { %p2883_p9 = pneg %p2882_p8 }
  0x21   : > { %p2890_p13 = pnand %p2889_p12, %p2883_p9 }
  0x23   : > { %2893 = shalt.err (!%p2890_p13)
}
  0x24   : > { %s3246_s24 = smov 128   ;;  %s3247_s25 = smov 8  }
  0x25   : > { %s3733_s5 = sld [smem:[#allocation35_spill]]  ;;  %s2905_s2 = scalar_lea.vmem %s3386_s29, 16 }
  0x26   : > { %p2906_p0 = scmp.ne.s32.totalorder %s3386_s29, %s2905_s2  ;;  %s2912_s1 = scalar_lea.vmem %s3386_s29, 32 }
  0x27   : > { %p2913_p7 = scmp.lt.s32.totalorder %s3386_s29, %s3386_s29  ;;  %p2914_p8 = scmp.lt.s32.totalorder %s2912_s1, %s2905_s2 }
  0x28   : > { %p2908_p1 = pnand %p2906_p0, %p3400_p6 }
  0x29   : > { %p2915_p9 = por %p2914_p8, %p2913_p7 }
  0x2a   : > { %p2909_p4 = pneg %p2908_p1 }
  0x2b   : > { %2763 = dma.hbm_to_vmem [thread:$0]  (!%p3390_p5), %s3733_s5, 512, %s548_s26, [#allocation5], %s3246_s24, %s3246_s24, %s3247_s25  }
  0x2c   : > { %p2916_p10 = pnand %p2915_p9, %p2909_p4 }
  0x2e   : > { %2919 = shalt.err (!%p2916_p10)
}
  0x2f   : > { %2769 = dma.hbm_to_vmem [thread:$0]  (!%p3390_p5), %s3700_s7, 16, %s3386_s29, [#allocation8]  }
  0x30   : > { %s2931_s26 = scalar_lea.vmem %s3394_s30, 512  ;;  %p2939_p0 = scmp.lt.s32.totalorder %s3394_s30, %s3394_s30 }
  0x31   : > { %p2932_p11 = scmp.ne.s32.totalorder %s3394_s30, %s2931_s26  ;;  %p2940_p1 = scmp.lt.s32.totalorder %s2931_s26, %s2931_s26 }
  0x33   : > { %p2934_p12 = pnand %p2932_p11, %p3400_p6  ;;  %p2941_p4 = por %p2940_p1, %p2939_p0 }
  0x35   : > { %p2935_p13 = pneg %p2934_p12 }
  0x37   : > { %p2942_p7 = pnand %p2941_p4, %p2935_p13 }
  0x39   : > { %2945 = shalt.err (!%p2942_p7)
}
  0x3a   : > { %2775 = dma.hbm_to_vmem [thread:$0]  (!%p3390_p5), %s3702_s9, 512, %s3394_s30, [#allocation11], %s3246_s24, %s3246_s24, %s3247_s25  }
  0x3b   : > { %s2957_s2 = scalar_lea.vmem %s622_s22, 16  ;;  %s2964_s29 = scalar_lea.vmem %s622_s22, 32 }
  0x3c   : > { %p2958_p8 = scmp.ne.s32.totalorder %s622_s22, %s2957_s2  ;;  %p2965_p11 = scmp.lt.s32.totalorder %s622_s22, %s622_s22 }
  0x3d   : > { %p2966_p12 = scmp.lt.s32.totalorder %s2964_s29, %s2957_s2 }
  0x3e   : > { %p2960_p9 = pnand %p2958_p8, %p3400_p6 }
  0x3f   : > { %p2967_p13 = por %p2966_p12, %p2965_p11 }
  0x40   : > { %p2961_p10 = pneg %p2960_p9 }
  0x42   : > { %p2968_p0 = pnand %p2967_p13, %p2961_p10 }
  0x44   : > { %2971 = shalt.err (!%p2968_p0)
}
  0x45   : > { %2781 = dma.hbm_to_vmem [thread:$0]  (!%p3390_p5), %s3705_s12, 16, %s622_s22, [#allocation14]  }
  0x46   : > { %s3248_s30 = smov [#allocation16]   ;;  %s3249_s25 = smov [#allocation19]  }
  0x47   : > { %s643_s24 = sshll.u32 %s3248_s30, 4  ;;  %s668_s5 = sshll.u32 %s3249_s25, 4  ;;  %s644_s24 = int_to_ptr.vmem [resolvable:$true] %s643_s24  ;;  %s669_s5 = int_to_ptr.vmem [resolvable:$true] %s668_s5 }
  0x48   : > { %s2983_s1 = scalar_lea.vmem %s644_s24, 64  ;;  %p2991_p8 = scmp.lt.s32.totalorder %s644_s24, %s644_s24 }
  0x49   : > { %p2984_p1 = scmp.ne.s32.totalorder %s644_s24, %s2983_s1  ;;  %p2992_p9 = scmp.lt.s32.totalorder %s2983_s1, %s2983_s1 }
  0x4b   : > { %p2986_p4 = pnand %p2984_p1, %p3400_p6  ;;  %p2993_p10 = por %p2992_p9, %p2991_p8 }
  0x4d   : > { %p2987_p7 = pneg %p2986_p4 }
  0x4f   : > { %p2994_p11 = pnand %p2993_p10, %p2987_p7 }
  0x51   : > { %2997 = shalt.err (!%p2994_p11)
}
  0x52   : > { %2787 = dma.hbm_to_vmem [thread:$0]  (!%p3390_p5), %s3707_s14, 64, %s644_s24, [#allocation17]  }
  0x53   : > { %s3009_s22 = scalar_lea.vmem %s669_s5, 16  ;;  %s3016_s21 = scalar_lea.vmem %s669_s5, 32 }
  0x54   : > { %p3010_p12 = scmp.ne.s32.totalorder %s669_s5, %s3009_s22  ;;  %p3017_p1 = scmp.lt.s32.totalorder %s669_s5, %s669_s5 }
  0x55   : > { %p3018_p4 = scmp.lt.s32.totalorder %s3016_s21, %s3009_s22 }
  0x56   : > { %p3012_p13 = pnand %p3010_p12, %p3400_p6 }
  0x57   : > { %p3019_p2 = por %p3018_p4, %p3017_p1 }
  0x58   : > { %p3013_p0 = pneg %p3012_p13 }
  0x5a   : > { %p3020_p8 = pnand %p3019_p2, %p3013_p0 }
  0x5c   : > { %3023 = shalt.err (!%p3020_p8)
}
  0x5d   : > { %2793 = dma.hbm_to_vmem [thread:$0]  (!%p3390_p5), %s3710_s17, 16, %s669_s5, [#allocation20]  }
  0x5e   : > { %s3250_s28 = smov [#allocation2]   ;;  %s3251_s30 = smov [#allocation6]  }
  0x5f   : > { %s531_s4 = sshll.u32 %s3250_s28, 4  ;;  %s561_s24 = sshll.u32 %s3251_s30, 4  ;;  %s532_s4 = int_to_ptr.vmem [resolvable:$true] %s531_s4  ;;  %s562_s24 = int_to_ptr.vmem [resolvable:$true] %s561_s24 }
  0x60   : > { %s3035_s25 = scalar_lea.vmem %s532_s4, 16  ;;  %s3042_s1 = scalar_lea.vmem %s532_s4, 32 }
  0x61   : > { %p3036_p7 = scmp.ne.s32.totalorder %s532_s4, %s3035_s25  ;;  %p3043_p2 = scmp.lt.s32.totalorder %s532_s4, %s532_s4 }
  0x62   : > { %p3044_p11 = scmp.lt.s32.totalorder %s3042_s1, %s3035_s25 }
  0x63   : > { %p3038_p9 = pnand %p3036_p7, %p3400_p6 }
  0x64   : > { %p3045_p12 = por %p3044_p11, %p3043_p2 }
  0x65   : > { %p3039_p10 = pneg %p3038_p9 }
  0x67   : > { %p3046_p13 = pnand %p3045_p12, %p3039_p10 }
  0x69   : > { %3049 = shalt.err (!%p3046_p13)
}
  0x6a   : > { %s3734_s20 = sld [smem:[#allocation32_spill]]  ;;  %s3061_s22 = scalar_lea.vmem %s562_s24, 16 }
  0x6b   : > { %p3062_p0 = scmp.ne.s32.totalorder %s562_s24, %s3061_s22  ;;  %s3068_s21 = scalar_lea.vmem %s562_s24, 32 }
  0x6c   : > { %p3069_p8 = scmp.lt.s32.totalorder %s562_s24, %s562_s24  ;;  %p3070_p7 = scmp.lt.s32.totalorder %s3068_s21, %s3061_s22 }
  0x6d   : > { %p3064_p1 = pnand %p3062_p0, %p3400_p6 }
  0x6e   : > { %p3071_p9 = por %p3070_p7, %p3069_p8 }
  0x6f   : > { %p3065_p4 = pneg %p3064_p1 }
  0x70   : > { %2760 = dma.hbm_to_vmem [thread:$0]  (!%p3390_p5), %s3734_s20, 16, %s532_s4, [#allocation3]  }
  0x71   : > { %p3072_p2 = pnand %p3071_p9, %p3065_p4 }
  0x73   : > { %3075 = shalt.err (!%p3072_p2)
}
  0x74   : > { %2766 = dma.hbm_to_vmem [thread:$0]  (!%p3390_p5), %s3699_s6, 16, %s562_s24, [#allocation5]  }
  0x75   : > { %s3252_s28 = smov [#allocation9]   ;;  %s3253_s30 = smov [#allocation12]  }
  0x76   : > { %s583_s4 = sshll.u32 %s3252_s28, 4  ;;  %s607_s25 = sshll.u32 %s3253_s30, 4  ;;  %s584_s4 = int_to_ptr.vmem [resolvable:$true] %s583_s4  ;;  %s608_s25 = int_to_ptr.vmem [resolvable:$true] %s607_s25 }
  0x77   : > { %s3087_s1 = scalar_lea.vmem %s584_s4, 16  ;;  %s3094_s26 = scalar_lea.vmem %s584_s4, 32 }
  0x78   : > { %p3088_p10 = scmp.ne.s32.totalorder %s584_s4, %s3087_s1  ;;  %p3095_p13 = scmp.lt.s32.totalorder %s584_s4, %s584_s4 }
  0x79   : > { %p3096_p0 = scmp.lt.s32.totalorder %s3094_s26, %s3087_s1 }
  0x7a   : > { %p3090_p11 = pnand %p3088_p10, %p3400_p6 }
  0x7b   : > { %p3097_p1 = por %p3096_p0, %p3095_p13 }
  0x7c   : > { %p3091_p12 = pneg %p3090_p11 }
  0x7e   : > { %p3098_p4 = pnand %p3097_p1, %p3091_p12 }
  0x80   : > { %3101 = shalt.err (!%p3098_p4)
}
  0x81   : > { %2772 = dma.hbm_to_vmem [thread:$0]  (!%p3390_p5), %s3701_s8, 16, %s584_s4, [#allocation8]  }
  0x82   : > { %s3113_s20 = scalar_lea.vmem %s608_s25, 16  ;;  %s3120_s22 = scalar_lea.vmem %s608_s25, 32 }
  0x83   : > { %p3114_p8 = scmp.ne.s32.totalorder %s608_s25, %s3113_s20  ;;  %p3121_p2 = scmp.lt.s32.totalorder %s608_s25, %s608_s25 }
  0x84   : > { %p3122_p10 = scmp.lt.s32.totalorder %s3120_s22, %s3113_s20 }
  0x85   : > { %p3116_p7 = pnand %p3114_p8, %p3400_p6 }
  0x86   : > { %p3123_p11 = por %p3122_p10, %p3121_p2 }
  0x87   : > { %p3117_p9 = pneg %p3116_p7 }
  0x89   : > { %p3124_p13 = pnand %p3123_p11, %p3117_p9 }
  0x8b   : > { %3127 = shalt.err (!%p3124_p13)
}
  0x8c   : > { %2778 = dma.hbm_to_vmem [thread:$0]  (!%p3390_p5), %s3703_s10, 16, %s608_s25, [#allocation11]  }
  0x8d   : > { %s3254_s29 = smov [#allocation15]   ;;  %s3255_s4 = smov [#allocation18]  }
  0x8e   : > { %s632_s28 = sshll.u32 %s3254_s29, 4  ;;  %s654_s30 = sshll.u32 %s3255_s4, 4  ;;  %s633_s28 = int_to_ptr.vmem [resolvable:$true] %s632_s28  ;;  %s655_s30 = int_to_ptr.vmem [resolvable:$true] %s654_s30 }
  0x8f   : > { %s3139_s1 = scalar_lea.vmem %s633_s28, 64  ;;  %p3147_p4 = scmp.lt.s32.totalorder %s633_s28, %s633_s28 }
  0x90   : > { %p3140_p12 = scmp.ne.s32.totalorder %s633_s28, %s3139_s1  ;;  %p3148_p8 = scmp.lt.s32.totalorder %s3139_s1, %s3139_s1 }
  0x92   : > { %p3142_p0 = pnand %p3140_p12, %p3400_p6  ;;  %p3149_p7 = por %p3148_p8, %p3147_p4 }
  0x94   : > { %p3143_p1 = pneg %p3142_p0 }
  0x96   : > { %p3150_p9 = pnand %p3149_p7, %p3143_p1 }
  0x98   : > { %3153 = shalt.err (!%p3150_p9)
}
  0x99   : > { %2784 = dma.hbm_to_vmem [thread:$0]  (!%p3390_p5), %s3706_s13, 64, %s633_s28, [#allocation14]  }
  0x9a   : > { %s3165_s25 = scalar_lea.vmem %s655_s30, 64  ;;  %p3173_p13 = scmp.lt.s32.totalorder %s655_s30, %s655_s30 }
  0x9b   : > { %p3166_p2 = scmp.ne.s32.totalorder %s655_s30, %s3165_s25  ;;  %p3174_p12 = scmp.lt.s32.totalorder %s3165_s25, %s3165_s25 }
  0x9d   : > { %p3168_p10 = pnand %p3166_p2, %p3400_p6  ;;  %p3175_p0 = por %p3174_p12, %p3173_p13 }
  0x9f   : > { %p3169_p11 = pneg %p3168_p10 }
  0xa1   : > { %p3176_p3 = pnand %p3175_p0, %p3169_p11 }
  0xa3   : > { %3179 = shalt.err (!%p3176_p3)
}
  0xa4   : > { %2790 = dma.hbm_to_vmem [thread:$0]  (!%p3390_p5), %s3708_s15, 64, %s655_s30, [#allocation17]  }
  0xa5   : > { %s3256_s22 = smov [#allocation21]  }
  0xa6   : > { %s679_s21 = sshll.u32 %s3256_s22, 4  ;;  %s680_s21 = int_to_ptr.vmem [resolvable:$true] %s679_s21 }
  0xa7   : > { %s3191_s2 = scalar_lea.vmem %s680_s21, 16  ;;  %s3198_s29 = scalar_lea.vmem %s680_s21, 32 }
  0xa8   : > { %p3192_p1 = scmp.ne.s32.totalorder %s680_s21, %s3191_s2  ;;  %p3199_p7 = scmp.lt.s32.totalorder %s680_s21, %s680_s21 }
  0xa9   : > { %p3200_p9 = scmp.lt.s32.totalorder %s3198_s29, %s3191_s2 }
  0xaa   : > { %p3194_p4 = pnand %p3192_p1, %p3400_p6 }
  0xab   : > { %p3201_p2 = por %p3200_p9, %p3199_p7 }
  0xac   : > { %p3195_p8 = pneg %p3194_p4 }
  0xae   : > { %p3202_p3 = pnand %p3201_p2, %p3195_p8 }
  0xb0   : > { %3205 = shalt.err (!%p3202_p3)
}
  0xb1   : > { %2796 = dma.hbm_to_vmem [thread:$0]  (!%p3390_p5), %s3711_s18, 16, %s680_s21, [#allocation20]  }
  0xb2   : > { %p3735_p10 = scmp.ne.s32.totalorder %s3730_s3, 0 }
  0xb3   : > { %p3736_p11 = scmp.eq.s32.totalorder (!%p3735_p10), %s3375_s27, 0 }
  0xb4   : > { %706 = sbr.rel (%p3735_p10) target bundleno = 3081 (0xc09), region = 104 }
  0xb9   : > { %3211 = dma.done.wait (%p3736_p11), [#allocation3], 16   ;;  %p3737_p6 = pmov %p3736_p11 }
  0xbb   : > { %3213 = vsyncadd (%p3737_p6), [#allocation3], 4294967280  ;;  %p3738_p13 = pmov %p3737_p6 }
  0xbc   : > { %p3739_p12 = pmov %p3737_p6 }
  0xbd   : > { %3215 = dma.done.wait (%p3738_p13), [#allocation5], 528  }
  0xbe   : > { %3217 = vsyncadd (%p3739_p12), [#allocation5], 4294966768  ;;  %p3740_p0 = pmov %p3737_p6 }
  0xc0   : > { %3219 = dma.done.wait (%p3740_p0), [#allocation8], 32   ;;  %p3741_p5 = pmov %p3740_p0 }
  0xc1   : > { %p3742_p1 = pmov %p3740_p0 }
  0xc2   : > { %3221 = vsyncadd (%p3741_p5), [#allocation8], 4294967264 }
  0xc3   : > { %3223 = dma.done.wait (%p3742_p1), [#allocation11], 528   ;;  %p3743_p4 = pmov %p3740_p0 }
  0xc4   : > { %p3744_p8 = pmov %p3740_p0 }
  0xc5   : > { %3225 = vsyncadd (%p3743_p4), [#allocation11], 4294966768 }
  0xc6   : > { %3227 = dma.done.wait (%p3744_p8), [#allocation14], 80   ;;  %p3745_p7 = pmov %p3740_p0 }
  0xc7   : > { %p3746_p9 = pmov %p3740_p0 }
  0xc8   : > { %3229 = vsyncadd (%p3745_p7), [#allocation14], 4294967216 }
  0xc9   : > { %3231 = dma.done.wait (%p3746_p9), [#allocation17], 128   ;;  %p3747_p2 = pmov %p3740_p0 }
  0xca   : > { %p3748_p3 = pmov %p3740_p0 }
  0xcb   : > { %3233 = vsyncadd (%p3747_p2), [#allocation17], 4294967168 }
  0xcc   : > { %3235 = dma.done.wait (%p3748_p3), [#allocation20], 32   ;;  %p3749_p10 = pmov %p3740_p0 }
  0xcd   : > { %p814_p11 = scmp.lt.s32.totalorder %s3375_s27, 1  ;;  %v3257_v0 = vmov 0.0   ;;  %vm3258_vm0 = vmmov 0   ;;  %s3750_s30 = sld [smem:[#allocation30_spill]]  ;;  %vm867_vm1 = vcmask 130048   ;;  %vm967_vm2 = vcmask 261120  }
  0xce   : > { %3237 = vsyncadd (%p3749_p10), [#allocation20], 4294967264  ;;  %2576 = vmatprep.subr.mxu0 %v3257_v0  ;;  %2580 = vmatprep.mubr.msk.f32.mxu0 %vm3258_vm0, %v3257_v0  ;;  %s3751_s25 = sld [smem:[#allocation31_spill]]  ;;  %v2450_v14 = vld [vmem:[#allocation2] ss:$0 sm:$0xff]  ;;  %v951_v19 = vld [vmem:[#allocation4 + $0x10] sm:$0xff] }
  0xcf   : > { %s3759_s27 = smov (!%p814_p11, %s3375_s27), 1  ;;  %2583 = vmatprep.subr.mxu1 %v3257_v0  ;;  %2591 = vmatprep.mubr.msk.f32.mxu1 %vm3258_vm0, %v3257_v0  ;;  %s3752_s2 = sld [smem:[#allocation33_spill]]  ;;  %v952_v17 = vld [vmem:[#allocation4 + $0x18] sm:$0xff]  ;;  %v950_v20 = vld [vmem:[#allocation4 + $0x8] sm:$0xff]  ;;  %v949_v21 = vld [vmem:[#allocation4] sm:$0xff]  ;;  %vm1269_vm3 = vcmask 64512  }
  0xd0   : > { %s2506_s3 = sshll.u32 %s3759_s27, 4  ;;  %v2454_v22 = vld [vmem:[#allocation7] ss:$0 sm:$0xff]  ;;  %v2452_v25 = vld [vmem:[#allocation6] ss:$0 sm:$0xff]  ;;  %v958_v43 = vld [vmem:[#allocation10 + $0x10] sm:$0xff] }
  0xd1   : > { %v2456_v30 = vld [vmem:[#allocation9] ss:$0 sm:$0xff]  ;;  %v957_v44 = vld [vmem:[#allocation10 + $0x8] sm:$0xff]  ;;  %v956_v48 = vld [vmem:[#allocation10] sm:$0xff]  ;;  %vm1597_vm4 = vcmask 1043456   ;;  %vm1584_vm5 = vcmask 31744  }
  0xd2   : > { %v959_v42 = vld [vmem:[#allocation10 + $0x18] sm:$0xff]  ;;  %v2461_v51 = vld [vmem:[#allocation12] ss:$0 sm:$0xff]  ;;  %v1571_v60 = vld [vmem:[#allocation16] sm:$0xf]  ;;  %s2507_s5 = sshll.u32 %s3759_s27, 5 }
  0xd3   : > { %s818_s1 = scalar_lea.vmem %s3750_s30, %s2506_s3  ;;  %v1465_v53 = vld [vmem:[%s3704_s11] sm:$0xff]  ;;  %v1570_v61 = vld [vmem:[#allocation15] sm:$0xf]  ;;  %v1572_v62 = vld [vmem:[#allocation18] sm:$0xf]  ;;  %s3755_s22 = sld [smem:[#allocation36_spill]] }
  0xd4   : > { %v824_v1 = vld [vmem:[%s818_s1] sm:$0xff]  ;;  %v859_v2 = vld [vmem:[%s3751_s25 + $0x8] sm:$0xff]  ;;  %s3756_s28 = sld [smem:[#allocation37_spill]] }
  0xd5   : > { %826 = vxpose.xlu0.b32.start [1/2] (short) (narrow) %v824_v1, 8  ;;  %2577 = vmatpush3.msra.mxu0 %v859_v2  ;;  %v858_v3 = vld [vmem:[%s3751_s25] sm:$0xff]  ;;  %s3753_s29 = smov %s3752_s2  ;;  %v944_v4 = vld [vmem:[%s3752_s2 + $0x18] sm:$0xff]  ;;  %v825_v5 = vld [vmem:[%s818_s1 + $0x8] sm:$0xff]  ;;  %s3754_s1 = sld [smem:[#allocation34_spill]] }
  0xd6   : > { %2578 = vmatprep.subr.mxu0 %v3257_v0  ;;  %2584 = vmatpush3.msra.mxu1 %v944_v4  ;;  %v943_v6 = vld [vmem:[%s3753_s29 + $0x10] sm:$0xff]  ;;  %v942_v7 = vld [vmem:[%s3753_s29 + $0x8] sm:$0xff]  ;;  %v941_v12 = vld [vmem:[%s3753_s29] sm:$0xff] }
  0xd7   : > { %2579 = vmatpush3.msra.mxu0 %v858_v3  ;;  %2585 = vmatprep.subr.mxu1 %v3257_v0 }
  0xd8   : > { %2594 = vmatprep.subr.mxu0 %v3257_v0  ;;  %2586 = vmatpush3.msra.mxu1 %v943_v6 }
  0xd9   : > { %827 = vxpose.xlu0.b32.end [2/2] (short) (narrow) %v825_v5, 8  ;;  %2587 = vmatprep.subr.mxu1 %v3257_v0 }
  0xda   : > { %2588 = vmatpush3.msra.mxu1 %v942_v7  ;;  %s823_s4 = scalar_lea.vmem %s3756_s28, %s2507_s5 }
  0xdb   : > { %2589 = vmatprep.subr.mxu1 %v3257_v0  ;;  %v948_v8 = vld [vmem:[%s3754_s1 + $0x18] sm:$0xff]  ;;  %v947_v10 = vld [vmem:[%s3754_s1 + $0x10] sm:$0xff]  ;;  %v946_v11 = vld [vmem:[%s3754_s1 + $0x8] sm:$0xff] }
  0xdc   : > { %2590 = vmatpush3.msra.mxu1 %v941_v12  ;;  %v945_v13 = vld [vmem:[%s3754_s1] sm:$0xff] }
  0xdd   : > { %2605 = vmatprep.subr.mxu1 %v3257_v0 }
 0x151   : > { %v842_v9 = vpop.trf.xlu0 }
 0x152   : > { %2581 = vmatmul.mubr.msk.f32.vlgmr.msra.gmra.mxu0 %vm867_vm1, %v842_v9  ;;  %v2468_v9 = vld [vmem:[%s3709_s16] ss:$0 sm:$0xff] }
 0x153   : > { %2595 = vmatpush3.msra.mxu0 %v948_v8  ;;  %2602 = vmatprep.mubr.msk.f32.mxu0 %vm3258_vm0, %v3257_v0 }
 0x154   : > { %2596 = vmatprep.subr.mxu0 %v3257_v0 }
 0x155   : > { %2597 = vmatpush3.msra.mxu0 %v947_v10 }
 0x156   : > { %2598 = vmatprep.subr.mxu0 %v3257_v0 }
 0x157   : > { %2599 = vmatpush3.msra.mxu0 %v946_v11 }
 0x158   : > { %2600 = vmatprep.subr.mxu0 %v3257_v0 }
 0x159   : > { %2601 = vmatpush3.msra.mxu0 %v945_v13 }
 0x15a   : > { %2616 = vmatprep.subr.mxu0 %v3257_v0 }
 0x212   : > { %v937_v15 = vpop.f32.mrf.mxu0 }
 0x213   : > { %v938_v16 = vadd.f32 %v2450_v14, %v937_v15  ;;  %v2474_v14 = vld [vmem:[#allocation19] ss:$0 sm:$0xff] }
 0x214   : > { %v2582_v18 = vpop.f32.mrf.mxu0 }
 0x215   : > { %2592 = vmatmul.mubr.msk.f32.vlgmr.msra.gmra.mxu1 %vm967_vm2, %v938_v16  ;;  %2603 = vmatmul.mubr.msk.f32.vlgmr.msra.gmra.mxu0 %vm967_vm2, %v938_v16 }
 0x216   : > { %2606 = vmatpush3.msra.mxu1 %v952_v17  ;;  %2613 = vmatprep.mubr.msk.f32.mxu1 %vm3258_vm0, %v3257_v0 }
 0x217   : > { %2607 = vmatprep.subr.mxu1 %v3257_v0  ;;  %2618 = vmatprep.mubr.msk.f32.mxu0 %vm3258_vm0, %v3257_v0 }
 0x218   : > { %2608 = vmatpush3.msra.mxu1 %v951_v19 }
 0x219   : > { %2609 = vmatprep.subr.mxu1 %v3257_v0 }
 0x21a   : > { %2610 = vmatpush3.msra.mxu1 %v950_v20 }
 0x21b   : > { %2611 = vmatprep.subr.mxu1 %v3257_v0 }
 0x21c   : > { %2612 = vmatpush3.msra.mxu1 %v949_v21 }
 0x21d   : > { %2614 = vmatmul.mubr.msk.f32.vlgmr.msra.gmra.mxu1 %vm967_vm2, %v938_v16  ;;  %2626 = vmatprep.subr.mxu1 %v3257_v0 }
 0x21e   : > { %2634 = vmatprep.mubr.msk.f32.mxu1 %vm3258_vm0, %v3257_v0  ;;  %2627 = vmatpush3.msra.mxu1 %v959_v42 }
 0x21f   : > { %2628 = vmatprep.subr.mxu1 %v3257_v0 }
 0x220   : > { %2629 = vmatpush3.msra.mxu1 %v958_v43 }
 0x221   : > { %2630 = vmatprep.subr.mxu1 %v3257_v0 }
 0x222   : > { %2631 = vmatpush3.msra.mxu1 %v957_v44 }
 0x223   : > { %2632 = vmatprep.subr.mxu1 %v3257_v0 }
 0x224   : > { %2633 = vmatpush3.msra.mxu1 %v956_v48 }
 0x225   : > { %2645 = vmatprep.subr.msk.mxu1 %vm1597_vm4, %v1570_v61 }
 0x2d5   : > { %v1037_v23 = vpop.f32.mrf.mxu1  ;;  %v1113_v24 = vpop.f32.mrf.mxu0 }
 0x2d6   : > { %v1114_v26 = vadd.f32 %v2454_v22, %v1113_v24  ;;  %v1038_v29 = vadd.f32 %v2452_v25, %v1037_v23  ;;  %v2480_v24 = vld [vmem:[#allocation21] ss:$0 sm:$0xff] }
 0x2d7   : > { %v2593_v27 = vpop.f32.mrf.mxu1  ;;  %v2604_v28 = vpop.f32.mrf.mxu0 }
 0x2d8   : > { %2617 = vmatpush3.xpose.msk.msra.mxu0 %vm967_vm2, %v1114_v26 }
 0x2d9   : > { %2621 = vmatprep.subr.mxu0 %v3257_v0 }
 0x2db   : > { %2619 = vmatmul.mubr.msk.f32.vlgmr.msra.gmra.mxu0 %vm967_vm2, %v1038_v29 }
 0x2dc   : > { %2623 = vmatprep.mubr.msk.f32.mxu0 %vm3258_vm0, %v3257_v0  ;;  %v2463_v0 = vld [vmem:[#allocation13] ss:$0 sm:$0xff] }
 0x2dd   : > { %v1189_v31 = vpop.f32.mrf.mxu1 }
 0x2de   : > { %v1190_v32 = vadd.f32 %v2456_v30, %v1189_v31 }
 0x2df   : > { %v2615_v33 = vpop.f32.mrf.mxu1 }
 0x2e0   : > { %2622 = vmatpush3.msra.mxu0 %v1190_v32 }
 0x2e1   : > { %2637 = vmatprep.subr.mxu0 %v1465_v53 }
 0x39b   : > { %v1265_v34 = vpop.f32.mrf.mxu0 }
 0x39c   : > { %v1270_v35 = vsel %vm1269_vm3, %v1265_v34, -inf }
 0x39d   : > { %1271 = vmax.xlane.f32.xlu1 %v1270_v35  ;;  %v2620_v36 = vpop.f32.mrf.mxu0 }
 0x426   : > { %v1272_v37 = vpop.xlane.xlu1 %1271 }
 0x427   : > { %v1273_v38 = vsub.f32 %v1265_v34, %v1272_v37 }
 0x429   : > { %v1274_v39 = vmul.f32 1.442695, %v1273_v38 }
 0x42b   : > { %2848 = vpow2.f32 %v1274_v39 }
 0x438   : > { %v2849_v40 = vpop.eup %2848 }
 0x439   : > { %v1276_v41 = vsel %vm1269_vm3, %v2849_v40, 0.0 }
 0x43a   : > { %1277 = vadd.xlane.f32.xlu1 %v1276_v41 }
 0x4c3   : > { %v1278_v45 = vpop.xlane.xlu1 %1277 }
 0x4c4   : > { %2850 = vrcp.f32 %v1278_v45 }
 0x4d1   : > { %v2851_v46 = vpop.eup %2850 }
 0x4d2   : > { %v1280_v47 = vmul.f32 %v2851_v46, %v2849_v40 }
 0x4d4   : > { %2624 = vmatmul.mubr.msk.f32.vlgmr.msra.gmra.mxu0 %vm1269_vm3, %v1280_v47 }
 0x4d5   : > { %2638 = vmatpush3.msra.mxu0 %v1465_v53 }
 0x4d6   : > { %2653 = vmatprep.subr.msk.mxu0 %vm1597_vm4, %v1571_v60 }
 0x594   : > { %v1350_v49 = vpop.f32.mrf.mxu0 }
 0x595   : > { %2635 = vmatmul.mubr.msk.f32.vlgmr.msra.gmra.mxu1 %vm967_vm2, %v1350_v49 }
 0x596   : > { %v2625_v50 = vpop.f32.mrf.mxu0  ;;  %2646 = vmatpush3.msk.msra.mxu1 %vm1597_vm4, %v1570_v61 }
 0x597   : > { %2661 = vmatprep.subr.msk.mxu1 %vm1597_vm4, %v1572_v62 }
 0x655   : > { %v1429_v52 = vpop.f32.mrf.mxu1 }
 0x656   : > { %v1430_v54 = vadd.f32 %v2461_v51, %v1429_v52 }
 0x657   : > { %v2636_v55 = vpop.f32.mrf.mxu1 }
 0x658   : > { %1433 = vxpose.xlu0.b32.start.end [1/1] (short) (narrow) %v1430_v54, 32 }
 0x6d4   : > { %v1449_v56 = vpop.trf.xlu0 }
 0x6d5   : > { %2639 = vmatprep.mubr.msk.f32.mxu0 %vm1269_vm3, %v1449_v56 }
 0x6d8   : > { %v1450_v57 = vpop.trf.xlu0 }
 0x6d9   : > { %2640 = vmatmul.mubr.msk.f32.vlgmr.msra.gmra.mxu0 %vm1269_vm3, %v1450_v57 }
 0x6da   : > { %2654 = vmatpush3.msk.msra.mxu0 %vm1597_vm4, %v1571_v60 }
 0x6dc   : > { %v1451_v58 = vpop.trf.xlu0 }
 0x6dd   : > { %2642 = vmatprep.mubr.msk.f32.mxu0 %vm1269_vm3, %v1451_v58 }
 0x6e0   : > { %v1452_v59 = vpop.trf.xlu0 }
 0x6e1   : > { %2643 = vmatmul.mubr.msk.f32.gmra.mxu0 %vm1269_vm3, %v1452_v59 }
 0x799   : > { %v2641_v63 = vpop.f32.mrf.mxu0 }
 0x79a   : > { %v1557_v3 = vadd.f32 %v2641_v63, %v2463_v0  ;;  %v1576_v63 = vld [vmem:[%s3712_s19] sm:$0xf] }
 0x79b   : > { %v1551_v1 = vpop.f32.mrf.mxu0 }
 0x79c   : > { %v1552_v2 = vadd.f32 %v2463_v0, %v1551_v1 }
 0x79e   : > { %2647 = vmatprep.mubr.msk.f32.mxu1 %vm1584_vm5, %v1552_v2  ;;  %2655 = vmatprep.mubr.msk.f32.mxu0 %vm1584_vm5, %v1552_v2 }
 0x79f   : > { %2648 = vmatmul.mubr.msk.f32.vlgmr.msra.gmra.mxu1 %vm1584_vm5, %v1557_v3  ;;  %2656 = vmatmul.mubr.msk.f32.vlgmr.msra.gmra.mxu0 %vm1584_vm5, %v1557_v3 }
 0x7a0   : > { %2662 = vmatpush3.msk.msra.mxu1 %vm1597_vm4, %v1572_v62 }
 0x7a1   : > { %v2644_v4 = vpop.f32.mrf.mxu0 }
 0x7a2   : > { %v1567_v7 = vadd.f32 %v2644_v4, %v2463_v0 }
 0x7a3   : > { %v1561_v5 = vpop.f32.mrf.mxu0 }
 0x7a4   : > { %v1562_v6 = vadd.f32 %v2463_v0, %v1561_v5 }
 0x7a6   : > { %2650 = vmatprep.mubr.msk.f32.mxu1 %vm1584_vm5, %v1562_v6  ;;  %2658 = vmatprep.mubr.msk.f32.mxu0 %vm1584_vm5, %v1562_v6 }
 0x7a7   : > { %2651 = vmatmul.mubr.msk.f32.gmra.mxu1 %vm1584_vm5, %v1567_v7  ;;  %2659 = vmatmul.mubr.msk.f32.gmra.mxu0 %vm1584_vm5, %v1567_v7 }
 0x7a8   : > { %2663 = vmatprep.mubr.msk.f32.mxu1 %vm1584_vm5, %v1552_v2 }
 0x7ab   : > { %2664 = vmatmul.mubr.msk.f32.vlgmr.msra.gmra.mxu1 %vm1584_vm5, %v1557_v3 }
 0x7ac   : > { %2666 = vmatprep.mubr.msk.f32.mxu1 %vm1584_vm5, %v1562_v6 }
 0x7af   : > { %2667 = vmatmul.mubr.msk.f32.gmra.mxu1 %vm1584_vm5, %v1567_v7 }
 0x85f   : > { %v2649_v8 = vpop.f32.mrf.mxu1  ;;  %v2657_v10 = vpop.f32.mrf.mxu0 }
 0x860   : > { %v1767_v23 = vadd.f32 %v2657_v10, %v2474_v14  ;;  %v1673_v32 = vadd.f32 %v2649_v8, %v2468_v9 }
 0x861   : > { %v1667_v11 = vpop.f32.mrf.mxu1  ;;  %v1761_v13 = vpop.f32.mrf.mxu0 }
 0x862   : > { %v1668_v12 = vadd.f32 %v2468_v9, %v1667_v11  ;;  %v1762_v28 = vadd.f32 %v2474_v14, %v1761_v13 }
 0x864   : > { %2677 = vmatprep.mubr.msk.f32.mxu0 %vm1584_vm5, %v1668_v12 }
 0x867   : > { %v2652_v15 = vpop.f32.mrf.mxu1  ;;  %v2660_v16 = vpop.f32.mrf.mxu0 }
 0x868   : > { %v1777_v17 = vadd.f32 %v2660_v16, %v2474_v14  ;;  %v1683_v34 = vadd.f32 %v2652_v15, %v2468_v9  ;;  %v2498_v16 = vld [vmem:[%s3755_s22] ss:$0 sm:$0xff] }
 0x869   : > { %v1677_v18 = vpop.f32.mrf.mxu1  ;;  %v1771_v19 = vpop.f32.mrf.mxu0 }
 0x86a   : > { %v1772_v20 = vadd.f32 %v2474_v14, %v1771_v19  ;;  %2669 = vmatprep.subr.msk.mxu0 %vm1584_vm5, %v1777_v17  ;;  %v1678_v33 = vadd.f32 %v2468_v9, %v1677_v18 }
 0x86b   : > { %v2665_v21 = vpop.f32.mrf.mxu1  ;;  %2670 = vmatpush3.xpose.msk.msra.mxu0 %vm1584_vm5, %v1777_v17 }
 0x86c   : > { %2671 = vmatprep.subr.msk.mxu0 %vm1584_vm5, %v1772_v20  ;;  %v1861_v30 = vadd.f32 %v2665_v21, %v2480_v24 }
 0x86d   : > { %v1855_v22 = vpop.f32.mrf.mxu1 }
 0x86e   : > { %v1856_v31 = vadd.f32 %v2480_v24, %v1855_v22 }
 0x86f   : > { %v2668_v25 = vpop.f32.mrf.mxu1  ;;  %2672 = vmatpush3.xpose.msk.msra.mxu0 %vm1584_vm5, %v1772_v20 }
 0x870   : > { %v1871_v26 = vadd.f32 %v2668_v25, %v2480_v24  ;;  %2673 = vmatprep.subr.msk.mxu0 %vm1584_vm5, %v1767_v23 }
 0x871   : > { %v1865_v27 = vpop.f32.mrf.mxu1 }
 0x872   : > { %v1866_v29 = vadd.f32 %v2480_v24, %v1865_v27  ;;  %2683 = vmatprep.subr.mxu1 %v1871_v26 }
 0x873   : > { %2674 = vmatpush3.xpose.msk.msra.mxu0 %vm1584_vm5, %v1767_v23  ;;  %2684 = vmatpush3.msra.mxu1 %v1871_v26 }
 0x874   : > { %2675 = vmatprep.subr.msk.mxu0 %vm1584_vm5, %v1762_v28  ;;  %2685 = vmatprep.subr.mxu1 %v1866_v29 }
 0x875   : > { %2686 = vmatpush3.msra.mxu1 %v1866_v29 }
 0x876   : > { %2687 = vmatprep.subr.mxu1 %v1861_v30 }
 0x877   : > { %2676 = vmatpush3.xpose.msk.msra.mxu0 %vm1584_vm5, %v1762_v28  ;;  %2688 = vmatpush3.msra.mxu1 %v1861_v30 }
 0x878   : > { %2689 = vmatprep.subr.mxu1 %v1856_v31 }
 0x879   : > { %2690 = vmatpush3.msra.mxu1 %v1856_v31 }
 0x87a   : > { %2678 = vmatmul.mubr.msk.f32.vlgmr.msra.gmra.mxu0 %vm1584_vm5, %v1673_v32  ;;  %2697 = vmatprep.subr.msk.mxu1 %vm1597_vm4, %v1576_v63 }
 0x87b   : > { %2680 = vmatprep.mubr.msk.f32.mxu0 %vm1584_vm5, %v1678_v33 }
 0x87e   : > { %2681 = vmatmul.mubr.msk.f32.gmra.mxu0 %vm1584_vm5, %v1683_v34 }
 0x93a   : > { %v2679_v35 = vpop.f32.mrf.mxu0 }
 0x93b   : > { %v1986_v36 = vsel %vm967_vm2, %v2679_v35, -inf }
 0x93c   : > { %1987 = vmax.xlane.f32.xlu0 %v1986_v36  ;;  %v1964_v37 = vpop.f32.mrf.mxu0 }
 0x93d   : > { %v1983_v38 = vsel %vm967_vm2, %v1964_v37, -inf }
 0x93e   : > { %1984 = vmax.xlane.f32.xlu1 %v1983_v38  ;;  %v2682_v39 = vpop.f32.mrf.mxu0 }
 0x93f   : > { %v1992_v42 = vsel %vm967_vm2, %v2682_v39, -inf }
 0x940   : > { %v1974_v40 = vpop.f32.mrf.mxu0 }
 0x941   : > { %v1989_v41 = vsel %vm967_vm2, %v1974_v40, -inf }
 0x942   : > { %1990 = vmax.xlane.f32.xlu1 %v1989_v41 }
 0x946   : > { %1993 = vmax.xlane.f32.xlu1 %v1992_v42 }
 0x9c5   : > { %v1988_v43 = vpop.xlane.xlu0 %1987 }
 0x9c6   : > { %v1996_v44 = vsub.f32 %v2679_v35, %v1988_v43 }
 0x9c7   : > { %v1985_v45 = vpop.xlane.xlu1 %1984 }
 0x9c8   : > { %v2001_v46 = vmul.f32 1.442695, %v1996_v44  ;;  %v1995_v47 = vsub.f32 %v1964_v37, %v1985_v45 }
 0x9ca   : > { %2852 = vpow2.f32 %v2001_v46  ;;  %v1999_v48 = vmul.f32 1.442695, %v1995_v47 }
 0x9cb   : > { %v1991_v49 = vpop.xlane.xlu1 %1990 }
 0x9cc   : > { %2854 = vpow2.f32 %v1999_v48  ;;  %v1997_v50 = vsub.f32 %v1974_v40, %v1991_v49 }
 0x9ce   : > { %v2003_v51 = vmul.f32 1.442695, %v1997_v50 }
 0x9cf   : > { %v1994_v52 = vpop.xlane.xlu1 %1993 }
 0x9d0   : > { %2856 = vpow2.f32 %v2003_v51  ;;  %v1998_v53 = vsub.f32 %v2682_v39, %v1994_v52 }
 0x9d2   : > { %v2005_v54 = vmul.f32 1.442695, %v1998_v53 }
 0x9d4   : > { %2858 = vpow2.f32 %v2005_v54 }
 0x9d7   : > { %v2853_v55 = vpop.eup %2852 }
 0x9d8   : > { %v2010_v56 = vsel %vm967_vm2, %v2853_v55, 0.0 }
 0x9d9   : > { %v2855_v57 = vpop.eup %2854  ;;  %2011 = vadd.xlane.f32.xlu1 %v2010_v56 }
 0x9da   : > { %v2007_v58 = vsel %vm967_vm2, %v2855_v57, 0.0 }
 0x9dd   : > { %v2857_v59 = vpop.eup %2856  ;;  %2008 = vadd.xlane.f32.xlu1 %v2007_v58 }
 0x9de   : > { %v2013_v60 = vsel %vm967_vm2, %v2857_v59, 0.0 }
 0x9e1   : > { %v2859_v61 = vpop.eup %2858  ;;  %2014 = vadd.xlane.f32.xlu1 %v2013_v60 }
 0x9e2   : > { %v2016_v62 = vsel %vm967_vm2, %v2859_v61, 0.0 }
 0x9e5   : > { %2017 = vadd.xlane.f32.xlu1 %v2016_v62 }
 0xa62   : > { %v2012_v0 = vpop.xlane.xlu1 %2011 }
 0xa63   : > { %2860 = vrcp.f32 %v2012_v0 }
 0xa66   : > { %v2009_v1 = vpop.xlane.xlu1 %2008 }
 0xa67   : > { %2862 = vrcp.f32 %v2009_v1 }
 0xa6a   : > { %v2015_v2 = vpop.xlane.xlu1 %2014 }
 0xa6b   : > { %2864 = vrcp.f32 %v2015_v2 }
 0xa6e   : > { %v2018_v3 = vpop.xlane.xlu1 %2017 }
 0xa6f   : > { %2866 = vrcp.f32 %v2018_v3 }
 0xa70   : > { %v2861_v4 = vpop.eup %2860 }
 0xa71   : > { %v2024_v7 = vmul.f32 %v2861_v4, %v2853_v55 }
 0xa74   : > { %v2863_v5 = vpop.eup %2862 }
 0xa75   : > { %v2023_v6 = vmul.f32 %v2863_v5, %v2855_v57 }
 0xa77   : > { %2691 = vmatprep.mubr.msk.f32.mxu1 %vm967_vm2, %v2023_v6 }
 0xa78   : > { %v2865_v8 = vpop.eup %2864  ;;  %2692 = vmatmul.mubr.msk.f32.vlgmr.msra.gmra.mxu1 %vm967_vm2, %v2024_v7 }
 0xa79   : > { %v2025_v9 = vmul.f32 %v2865_v8, %v2857_v59  ;;  %2698 = vmatpush3.msk.msra.mxu1 %vm1597_vm4, %v1576_v63 }
 0xa7b   : > { %2694 = vmatprep.mubr.msk.f32.mxu1 %vm967_vm2, %v2025_v9 }
 0xa7c   : > { %v2867_v10 = vpop.eup %2866 }
 0xa7d   : > { %v2026_v11 = vmul.f32 %v2867_v10, %v2859_v61 }
 0xa7f   : > { %2695 = vmatmul.mubr.msk.f32.gmra.mxu1 %vm967_vm2, %v2026_v11 }
 0xb38   : > { %v2693_v12 = vpop.f32.mrf.mxu1 }
 0xb3a   : > { %v2105_v13 = vpop.f32.mrf.mxu1 }
 0xb3b   : > { %2699 = vmatprep.mubr.msk.f32.mxu1 %vm1584_vm5, %v2105_v13 }
 0xb3c   : > { %2700 = vmatmul.mubr.msk.f32.vlgmr.msra.gmra.mxu1 %vm1584_vm5, %v2693_v12 }
 0xb3f   : > { %v2696_v14 = vpop.f32.mrf.mxu1 }
 0xb41   : > { %v2115_v15 = vpop.f32.mrf.mxu1 }
 0xb42   : > { %2702 = vmatprep.mubr.msk.f32.mxu1 %vm1584_vm5, %v2115_v15 }
 0xb43   : > { %2703 = vmatmul.mubr.msk.f32.gmra.mxu1 %vm1584_vm5, %v2696_v14 }
 0xbfc   : > { %v2701_v17 = vpop.f32.mrf.mxu1 }
 0xbfd   : > { %v2217_v18 = vadd.f32 %v2701_v17, %v2498_v16 }
 0xbfe   : > { %v2211_v19 = vpop.f32.mrf.mxu1 }
 0xbff   : > { %2231 = vst.msk [vmem:[%s823_s4 + $0x8] sm:$0xff] %vm1584_vm5, %v2217_v18  ;;  %v2212_v20 = vadd.f32 %v2498_v16, %v2211_v19 }
 0xc01   : > { %2230 = vst.msk [vmem:[%s823_s4] sm:$0xff] %vm1584_vm5, %v2212_v20 }
 0xc03   : > { %v2704_v21 = vpop.f32.mrf.mxu1 }
 0xc04   : > { %v2227_v22 = vadd.f32 %v2704_v21, %v2498_v16 }
 0xc05   : > { %v2221_v23 = vpop.f32.mrf.mxu1 }
 0xc06   : > { %2233 = vst.msk [vmem:[%s823_s4 + $0x18] sm:$0xff] %vm1584_vm5, %v2227_v22  ;;  %v2222_v24 = vadd.f32 %v2498_v16, %v2221_v23 }
 0xc08   : > { %2232 = vst.msk [vmem:[%s823_s4 + $0x10] sm:$0xff] %vm1584_vm5, %v2222_v24 }
 0xc09 PF: > { %s3757_s27 = sld [smem:[#allocation29_spill]] }
 0xc0f   : > { %s38_s2 = sadd.s32 1, %s3757_s27  }
 0xc10   : > { %p35_p6 = scmp.ge.s32.totalorder %s38_s2, 4  }
 0xc12   :  { %37 = sbr.rel (!%p35_p6) target bundleno = 16 (0x10), region = 187 }
 0xc17   :  { %2255 = vsyncpa [#allocation3], 1 }
 0xc18   :  { %2257 = vsyncpa [#allocation3 + $0x1], 1 }
 0xc19   :  { %2258 = vsyncpa [#allocation5], 1 }
 0xc1a   :  { %2259 = vsyncpa [#allocation8], 1 }
 0xc1b   :  { %2260 = vsyncpa [#allocation11], 1 }
 0xc1c   :  { %2261 = vsyncpa [#allocation14], 1 }
 0xc1d   :  { %2262 = vsyncpa [#allocation17], 1 }
 0xc1e   :  { %2263 = vsyncpa [#allocation20], 1 }

</bundles_post_ra>
